<compile_context>
chip_gen: v7x
topology: tpu7x:2x2x1
jax: 0.10.0
libtpu: 0.0.40
codegen_flags: <defaults>
</compile_context>

<pallas_src>
import functools

import jax
import jax.numpy as jnp
from jax.experimental import pallas as pl
from jax.experimental.pallas import tpu as pltpu


# ---------------------------------------------------------------------------
# Kernel 1: global average pooling (stream-reduce over the spatial axis).
# ---------------------------------------------------------------------------
def _pool_kernel(x_ref, o_ref, acc_ref, *, inv_hw, tile_hw, hw, mask_tail):
    """grid = (row_blocks, hw_steps).

    x_ref   : (bc_tile, tile_hw) current spatial tile (native dtype)
    o_ref   : (bc_tile, 1) f32 pooled mean, written on the last hw step only
    acc_ref : (bc_tile, 1) f32 running spatial sum (VMEM scratch)
    """
    h_step = pl.program_id(1)
    n_hw = pl.num_programs(1)

    @pl.when(h_step == 0)
    def _init():
        acc_ref[...] = jnp.zeros_like(acc_ref)

    if mask_tail:
        # Unmasked fast path for interior tiles; masked path only on the last
        # hw step (where the block may run past HW).
        @pl.when(h_step < n_hw - 1)
        def _body():
            acc_ref[...] += jnp.sum(
                x_ref[...].astype(jnp.float32), axis=-1, keepdims=True)

        @pl.when(h_step == n_hw - 1)
        def _tail():
            x = x_ref[...].astype(jnp.float32)
            lane = jax.lax.broadcasted_iota(jnp.int32, x.shape, dimension=1)
            x = jnp.where(h_step * tile_hw + lane < hw, x, 0.0)
            acc_ref[...] += jnp.sum(x, axis=-1, keepdims=True)
    else:
        acc_ref[...] += jnp.sum(
            x_ref[...].astype(jnp.float32), axis=-1, keepdims=True)

    @pl.when(h_step == n_hw - 1)
    def _finalize():
        o_ref[...] = (acc_ref[...] * inv_hw).astype(o_ref.dtype)


# ---------------------------------------------------------------------------
# Kernel 2: 1x1 conv -> ReLU -> 1x1 conv -> sigmoid on the pooled (B, C) vector.
# ---------------------------------------------------------------------------
def _fc_kernel(p_ref, w1t_ref, b1_ref, w2t_ref, b2_ref, o_ref):
    p = p_ref[...]                                                  # (B, C) f32
    h = jnp.dot(p, w1t_ref[...],
                preferred_element_type=jnp.float32) + b1_ref[...]
    h = jnp.maximum(h, 0.0)
    y = jnp.dot(h, w2t_ref[...],
                preferred_element_type=jnp.float32) + b2_ref[...]
    o_ref[...] = jax.nn.sigmoid(y).astype(o_ref.dtype)


# ---------------------------------------------------------------------------
# Tiling helpers.
# ---------------------------------------------------------------------------
def _round_up(x, m):
    return (x + m - 1) // m * m


def _round_down_mult(x, m):
    return (x // m) * m


def _vmem_capacity_bytes():
    try:
        info = pltpu.get_tpu_info()
        cap = getattr(info, "vmem_capacity_bytes", None)
        if cap:
            return int(cap)
    except Exception:
        pass
    return 64 << 20  # conservative default (v7x per-core VMEM)


def _pick_tiles(bc, hw, itemsize, x_budget_bytes):
    """Pick (bc_tile, tile_hw) so the double-buffered x block fits the budget.

    Legality: bc_tile is a multiple of 8 or equals bc; tile_hw is a multiple of
    128 or equals hw (full-extent blocks are always legal).
    """
    min_rows = 8
    full_row_bytes = 2 * min_rows * hw * itemsize
    if full_row_bytes <= x_budget_bytes:
        # A full spatial row fits: single hw step, no tail mask needed.
        tile_hw = hw
    else:
        # Tile the spatial axis; cap lane width at 8 K (32 KiB contiguous per
        # row for f32) and give the rest of the budget to more rows.
        lanes_fit = x_budget_bytes // (2 * min_rows * itemsize)
        tile_hw = min(max(_round_down_mult(lanes_fit, 128), 128), 8192)

    rows_fit = x_budget_bytes // max(2 * tile_hw * itemsize, 1)
    bc_tile = max(min_rows, _round_down_mult(rows_fit, min_rows))
    if bc_tile >= bc:
        bc_tile = bc
    # Keep >= 2 row blocks when possible so v7x's second TensorCore has work
    # (neutral on single-TC v5e/v6e).
    if bc >= 2 * min_rows:
        half = _round_up(pl.cdiv(bc, 2), min_rows)
        bc_tile = min(bc_tile, half)
    return bc_tile, tile_hw


# ---------------------------------------------------------------------------
# Wrapper.
# ---------------------------------------------------------------------------
def ci_forward(x_nchw, w1, b1, w2, b2, *, max_tile_hw=None, max_bc_tile=None):
    """x_nchw: (B, C, H, W); conv weights w*: (C, C, 1, 1); biases b*: (C,)."""
    B, C, H, W = x_nchw.shape
    HW = H * W
    BC = B * C
    itemsize = jnp.dtype(x_nchw.dtype).itemsize

    x_flat = x_nchw.reshape(BC, HW)          # keep native storage dtype for DMA

    # --- per-generation VMEM budget for the double-buffered x tile ----------
    vmem_cap = _vmem_capacity_bytes()
    x_budget = min(int(vmem_cap * 0.55), 80 << 20)

    bc_tile, tile_hw = _pick_tiles(BC, HW, itemsize, x_budget)

    # Tuning/test overrides (clamped to legal multiples so lowering never fails).
    if max_tile_hw is not None and max_tile_hw < tile_hw:
        tile_hw = max(128, _round_down_mult(max_tile_hw, 128))
        if tile_hw >= HW:
            tile_hw = HW
    if max_bc_tile is not None and max_bc_tile < bc_tile:
        bc_tile = max(8, _round_down_mult(max_bc_tile, 8))
        if bc_tile >= BC:
            bc_tile = BC

    n_row_blocks = pl.cdiv(BC, bc_tile)
    n_hw_steps = pl.cdiv(HW, tile_hw)
    mask_tail = (tile_hw != HW) and (HW % tile_hw != 0)

    # vmem_limit derived from the actually-chosen block (plus slack), so the
    # invariant "blocks fit the limit" holds on every generation.
    x_block_bytes = bc_tile * tile_hw * itemsize
    vmem_limit = max(32 << 20, 2 * x_block_bytes + (4 << 20))
    vmem_limit = min(vmem_limit, int(vmem_cap * 0.9))

    pool_kernel = functools.partial(
        _pool_kernel,
        inv_hw=1.0 / float(HW),
        tile_hw=tile_hw,
        hw=HW,
        mask_tail=mask_tail,
    )

    pooled = pl.pallas_call(
        pool_kernel,
        out_shape=jax.ShapeDtypeStruct((BC, 1), jnp.float32),
        grid_spec=pltpu.PrefetchScalarGridSpec(
            num_scalar_prefetch=0,
            grid=(n_row_blocks, n_hw_steps),
            in_specs=[
                pl.BlockSpec((bc_tile, tile_hw), lambda r, h: (r, h)),
            ],
            out_specs=pl.BlockSpec((bc_tile, 1), lambda r, h: (r, 0)),
            scratch_shapes=[pltpu.VMEM((bc_tile, 1), jnp.float32)],
        ),
        compiler_params=pltpu.CompilerParams(
            dimension_semantics=("parallel", "arbitrary"),
            vmem_limit_bytes=int(vmem_limit),
        ),
        cost_estimate=pl.CostEstimate(
            flops=BC * HW,
            transcendentals=0,
            bytes_accessed=BC * HW * itemsize + BC * 4),
    )(x_flat)

    pooled_2d = pooled.reshape(B, C)

    # --- tiny FC part: 1x1 convs on a 1x1 spatial map == dense layers --------
    # Pre-transpose weights once in the wrapper (no in-kernel XLU transpose).
    w1t = w1.reshape(C, C).T.astype(jnp.float32)
    w2t = w2.reshape(C, C).T.astype(jnp.float32)
    b1_2d = b1.reshape(1, C).astype(jnp.float32)
    b2_2d = b2.reshape(1, C).astype(jnp.float32)

    y = pl.pallas_call(
        _fc_kernel,
        out_shape=jax.ShapeDtypeStruct((B, C), x_nchw.dtype),
        grid_spec=pltpu.PrefetchScalarGridSpec(
            num_scalar_prefetch=0,
            grid=(1,),
            in_specs=[
                pl.BlockSpec((B, C), lambda i: (0, 0)),   # pooled (f32)
                pl.BlockSpec((C, C), lambda i: (0, 0)),   # w1^T
                pl.BlockSpec((1, C), lambda i: (0, 0)),   # b1
                pl.BlockSpec((C, C), lambda i: (0, 0)),   # w2^T
                pl.BlockSpec((1, C), lambda i: (0, 0)),   # b2
            ],
            out_specs=pl.BlockSpec((B, C), lambda i: (0, 0)),
        ),
        cost_estimate=pl.CostEstimate(
            flops=4 * B * C * C,
            transcendentals=B * C,
            bytes_accessed=(2 * C * C + 2 * C + 2 * B * C) * 4),
    )(pooled_2d, w1t, b1_2d, w2t, b2_2d)

    # Match PyTorch output shape (B, C, 1, 1).
    return y.reshape(B, C, 1, 1)


# ---------------------------------------------------------------------------
# Reference & self-test.
# ---------------------------------------------------------------------------
def _reference(x_nchw, w1, b1, w2, b2):
    B, C, H, W = x_nchw.shape
    pooled = jnp.mean(x_nchw.astype(jnp.float32), axis=(2, 3))       # (B, C)
    h = jnp.maximum(pooled @ w1.reshape(C, C).T + b1, 0.0)
    y = jax.nn.sigmoid(h @ w2.reshape(C, C).T + b2)
    return y.astype(x_nchw.dtype).reshape(B, C, 1, 1)


if __name__ == "__main__":
    key = jax.random.PRNGKey(0)
    B, C, H, W = 2, 4, 16, 16

    kx, kw1, kb1, kw2, kb2, kx2, kx3 = jax.random.split(key, 7)
    x = jax.random.normal(kx, (B, C, H, W), dtype=jnp.float32)

    # Deterministic parameter init (shapes follow nn.Conv2d(C, C, 1)).
    fan_in = C  # kernel_size = 1
    bound = 1.0 / (fan_in ** 0.5)
    w1 = jax.random.uniform(kw1, (C, C, 1, 1), jnp.float32, -bound, bound)
    b1 = jax.random.uniform(kb1, (C,), jnp.float32, -bound, bound)
    w2 = jax.random.uniform(kw2, (C, C, 1, 1), jnp.float32, -bound, bound)
    b2 = jax.random.uniform(kb2, (C,), jnp.float32, -bound, bound)

    # 1) Default tiling (single step at this toy size).
    out = jax.block_until_ready(ci_forward(x, w1, b1, w2, b2))
    ref = _reference(x, w1, b1, w2, b2)
    assert out.shape == (B, C, 1, 1), out.shape
    assert jnp.allclose(out, ref, atol=1e-5, rtol=1e-5), (
        float(jnp.max(jnp.abs(out - ref))))

    # 2) Force a 2-step spatial reduction to exercise the accumulator pipeline.
    out_tiled = jax.block_until_ready(
        ci_forward(x, w1, b1, w2, b2, max_tile_hw=128))
    assert jnp.allclose(out_tiled, ref, atol=1e-5, rtol=1e-5), (
        float(jnp.max(jnp.abs(out_tiled - ref))))

    # 3) Non-multiple spatial size to exercise the gated tail-tile mask.
    x2 = jax.random.normal(kx2, (B, C, 5, 50), dtype=jnp.float32)     # HW = 250
    out2 = jax.block_until_ready(
        ci_forward(x2, w1, b1, w2, b2, max_tile_hw=128))
    ref2 = _reference(x2, w1, b1, w2, b2)
    assert jnp.allclose(out2, ref2, atol=1e-5, rtol=1e-5), (
        float(jnp.max(jnp.abs(out2 - ref2))))

    # 4) Larger B*C to exercise the 2-D grid (parallel row blocks x hw steps).
    B2, C2, H2, W2 = 4, 8, 8, 32                                      # BC = 32
    x3 = jax.random.normal(kx3, (B2, C2, H2, W2), dtype=jnp.float32)
    kw3, kb3, kw4, kb4 = jax.random.split(kw1, 4)
    bound2 = 1.0 / (C2 ** 0.5)
    w1b = jax.random.uniform(kw3, (C2, C2, 1, 1), jnp.float32, -bound2, bound2)
    b1b = jax.random.uniform(kb3, (C2,), jnp.float32, -bound2, bound2)
    w2b = jax.random.uniform(kw4, (C2, C2, 1, 1), jnp.float32, -bound2, bound2)
    b2b = jax.random.uniform(kb4, (C2,), jnp.float32, -bound2, bound2)
    out3 = jax.block_until_ready(
        ci_forward(x3, w1b, b1b, w2b, b2b, max_tile_hw=128, max_bc_tile=16))
    ref3 = _reference(x3, w1b, b1b, w2b, b2b)
    assert jnp.allclose(out3, ref3, atol=1e-5, rtol=1e-5), (
        float(jnp.max(jnp.abs(out3 - ref3))))

    print("KERNEL_OK")
</pallas_src>

<mosaic_0001>
module attributes {stable_mosaic.version = 11 : i64} {
  func.func @_pool_kernel(%arg0: i32, %arg1: i32, %arg2: memref<8x256xf32, #tpu.memory_space<vmem>>, %arg3: memref<8x1xf32, #tpu.memory_space<vmem>>, %arg4: memref<8x1xf32, #tpu.memory_space<vmem>>) attributes {dimension_semantics = [#tpu.dimension_semantics<parallel>, #tpu.dimension_semantics<arbitrary>], iteration_bounds = array<i64: 1, 1>, scalar_prefetch = 0 : i64, scratch_operands = 1 : i64, tpu.core_type = #tpu.core_type<tc>, window_params = [{transform_indices = @transform_0, window_bounds = array<i64: 8, 256>}, {transform_indices = @transform_1, window_bounds = array<i64: 8, 1>}]} {
    %c0_i32 = arith.constant 0 : i32
    %0 = arith.cmpi eq, %arg1, %c0_i32 : i32
    %1 = arith.extui %0 : i1 to i32
    %c0_i32_0 = arith.constant 0 : i32
    %2 = arith.cmpi ne, %1, %c0_i32_0 : i32
    scf.if %2 {
      %cst_8 = arith.constant 0.000000e+00 : f32
      %12 = vector.broadcast %cst_8 : f32 to vector<8x1xf32>
      %c0_9 = arith.constant 0 : index
      %c0_10 = arith.constant 0 : index
      %13 = vector.load %arg4[%c0_9, %c0_10] : memref<8x1xf32, #tpu.memory_space<vmem>>, vector<8x1xf32>
      tpu.vector_store %arg4[%c0_9, %c0_10], %12 {strides = array<i32>} : memref<8x1xf32, #tpu.memory_space<vmem>>, vector<8x1xf32>,
    } else {
    }
    %c0 = arith.constant 0 : index
    %c0_1 = arith.constant 0 : index
    %3 = vector.load %arg4[%c0, %c0_1] : memref<8x1xf32, #tpu.memory_space<vmem>>, vector<8x1xf32>
    %c0_2 = arith.constant 0 : index
    %c0_3 = arith.constant 0 : index
    %4 = vector.load %arg2[%c0_2, %c0_3] : memref<8x256xf32, #tpu.memory_space<vmem>>, vector<8x256xf32>
    %cst = arith.constant dense<0.000000e+00> : vector<8xf32>
    %5 = vector.multi_reduction <add>, %4, %cst [1] : vector<8x256xf32> to vector<8xf32>
    %6 = vector.shape_cast %5 : vector<8xf32> to vector<8x1xf32>
    %7 = arith.addf %3, %6 : vector<8x1xf32>
    %c0_4 = arith.constant 0 : index
    %c0_5 = arith.constant 0 : index
    %8 = vector.load %arg4[%c0_4, %c0_5] : memref<8x1xf32, #tpu.memory_space<vmem>>, vector<8x1xf32>
    tpu.vector_store %arg4[%c0_4, %c0_5], %7 {strides = array<i32>} : memref<8x1xf32, #tpu.memory_space<vmem>>, vector<8x1xf32>,
    %c0_i32_6 = arith.constant 0 : i32
    %9 = arith.cmpi eq, %arg1, %c0_i32_6 : i32
    %10 = arith.extui %9 : i1 to i32
    %c0_i32_7 = arith.constant 0 : i32
    %11 = arith.cmpi ne, %10, %c0_i32_7 : i32
    scf.if %11 {
      %c0_8 = arith.constant 0 : index
      %c0_9 = arith.constant 0 : index
      %12 = vector.load %arg4[%c0_8, %c0_9] : memref<8x1xf32, #tpu.memory_space<vmem>>, vector<8x1xf32>
      %cst_10 = arith.constant 3.906250e-03 : f32
      %13 = vector.broadcast %cst_10 : f32 to vector<8x1xf32>
      %14 = arith.mulf %12, %13 : vector<8x1xf32>
      %c0_11 = arith.constant 0 : index
      %c0_12 = arith.constant 0 : index
      %15 = vector.load %arg3[%c0_11, %c0_12] : memref<8x1xf32, #tpu.memory_space<vmem>>, vector<8x1xf32>
      tpu.vector_store %arg3[%c0_11, %c0_12], %14 {strides = array<i32>} : memref<8x1xf32, #tpu.memory_space<vmem>>, vector<8x1xf32>,
    } else {
    }
    return
  }
  func.func @transform_0(%arg0: i32, %arg1: i32) -> (i32, i32) {
    %c0_i32 = arith.constant 0 : i32
    return %arg0, %arg1 : i32, i32
  }
  func.func @transform_1(%arg0: i32, %arg1: i32) -> (i32, i32) {
    %c0_i32 = arith.constant 0 : i32
    %c0_i32_0 = arith.constant 0 : i32
    return %arg0, %c0_i32 : i32, i32
  }
}

</mosaic_0001>

<bundles_post_ra>
// kernel: tpu_custom_call.1
= control target key start
LH: loop header
LB: loop body
LE: loop exit
PB: predicated region body
PF: predicated region fallthrough
CT: control target
= control target key end

     0   :  { %6 = vsyncpa [#allocation4], 0  ;;  %s72_s6 = smov [#allocation3]   ;;  %s99_s0 = inlined_call_operand.hbm [shape: f32[8,256], index: 0, kind: input, shape index: {}]   ;;  %s100_s1 = inlined_call_operand.vmem [shape: f32[8,1], index: 1, kind: output, shape index: {}]  }
   0x1   :  { %s13_s7 = sshll.u32 %s72_s6, 4  ;;  %s48_s10 = scalar_lea.hbm %s99_s0, 256  ;;  %s14_s7 = int_to_ptr.vmem [resolvable:$true] %s13_s7 }
   0x2   :  { %p49_p0 = scmp.ne.s32.totalorder %s99_s0, %s48_s10  ;;  %p52_p1 = scmp.lt.u32.totalorder %s48_s10, %s99_s0 }
   0x4   :  { %p54_p2 = pnand %p52_p1, %p49_p0 }
   0x6   :  { %57 = shalt.err (!%p54_p2)
}
   0x7   :  { %s58_s15 = scalar_lea.vmem %s14_s7, 256  ;;  %p63_p4 = scmp.lt.s32.totalorder %s14_s7, %s14_s7 }
   0x8   :  { %p59_p3 = scmp.ne.s32.totalorder %s14_s7, %s58_s15  ;;  %p64_p5 = scmp.lt.s32.totalorder %s58_s15, %s58_s15 }
   0xa   :  { %p65_p6 = por %p64_p5, %p63_p4 }
   0xc   :  { %p66_p7 = pnand %p65_p6, %p59_p3 }
   0xe   :  { %69 = shalt.err (!%p66_p7)
}
   0xf   :  { %16 = dma.hbm_to_vmem [thread:$0]  %s99_s0, 256, %s14_s7, [#allocation4]  }
  0x10   :  { %70 = dma.done.wait [#allocation4], 256  }
  0x11   :  { %71 = vsyncadd [#allocation4], 4294967040  ;;  %vm24_vm0 = vcmask 7168   ;;  %v73_v0 = vmov 0.0   ;;  %v27_v1 = vld [vmem:[#allocation3] sm:$0xff]  ;;  %v28_v2 = vld [vmem:[#allocation3 + $0x8] sm:$0xff] }
  0x12   :  { %25 = vst.msk [vmem:[#allocation2] sm:$0xff] %vm24_vm0, %v73_v0  ;;  %v29_v3 = vadd.f32 %v28_v2, %v27_v1 }
  0x14   :  { %30 = vadd.xlane.f32.xlu0 %v29_v3 }
  0x19   :  { %v26_v4 = vld [vmem:[#allocation2] sm:$0xff] }
  0xa1   :  { %v31_v5 = vpop.xlane.xlu0 %30 }
  0xa2   :  { %v32_v6 = vadd.f32 %v31_v5, %v26_v4 }
  0xa4   :  { %34 = vst.msk [vmem:[#allocation2] sm:$0xff] %vm24_vm0, %v32_v6 }
  0xab   :  { %v38_v7 = vld [vmem:[#allocation2] sm:$0xff] }
  0xac   :  { %v39_v8 = vmul.f32 0.00390625, %v38_v7 }
  0xae   :  { %40 = vst.msk [vmem:[%s100_s1] sm:$0xff] %vm24_vm0, %v39_v8 }
  0xaf   :  { %45 = vsyncpa [#allocation4], 1 }

</bundles_post_ra>
